<compile_context>
chip_gen: v7x
topology: tpu7x:2x2x1
jax: 0.10.0
libtpu: 0.0.40
codegen_flags: <defaults>
</compile_context>

<pallas_src>
import functools

import jax
import jax.numpy as jnp
import numpy as np
from jax.experimental import pallas as pl
from jax.experimental.pallas import tpu as pltpu


# ---------------------------------------------------------------------------
# Host-side construction of the (static) pooling / interpolation matrices.
# ---------------------------------------------------------------------------
def _round_up(x: int, m: int) -> int:
    return (x + m - 1) // m * m


def _avgpool_matrix(size: int, kernel: int, stride: int) -> np.ndarray:
    """1-D AvgPool operator: (out, size), PyTorch AvgPool2d (no padding, floor mode)."""
    out = (size - kernel) // stride + 1
    a = np.zeros((out, size), np.float32)
    for p in range(out):
        a[p, p * stride: p * stride + kernel] = 1.0 / kernel
    return a


def _bilinear_matrix(out_size: int, in_size: int) -> np.ndarray:
    """1-D bilinear resize operator: (out, in), PyTorch align_corners=False."""
    m = np.zeros((out_size, in_size), np.float32)
    scale = in_size / out_size
    for i in range(out_size):
        src = (i + 0.5) * scale - 0.5
        src = max(src, 0.0)                      # PyTorch clamps negative source idx to 0
        i0 = min(int(np.floor(src)), in_size - 1)
        i1 = min(i0 + 1, in_size - 1)
        lam = src - i0
        m[i, i0] += 1.0 - lam
        m[i, i1] += lam
    return m


def _pad2d(a: np.ndarray, rows: int, cols: int) -> np.ndarray:
    out = np.zeros((rows, cols), a.dtype)
    out[: a.shape[0], : a.shape[1]] = a
    return out


# ---------------------------------------------------------------------------
# Phase 0: per-image SE gate  w_se = sigmoid(AvgPool(x) @ W2 + b2)
#   grid = (N, HW/TILE); reduction over the HW tiles with an f32 VMEM accumulator.
# ---------------------------------------------------------------------------
def _se_weight_kernel(pool_ref, x_ref, w2_ref, b2_ref, wse_ref, acc_ref):
    t = pl.program_id(1)

    @pl.when(t == 0)
    def _():
        acc_ref[...] = jnp.zeros_like(acc_ref)

    # partial avg-pool: (P_pad, TILE) @ (TILE, Cin_pad), accumulated in f32
    acc_ref[...] += jnp.dot(pool_ref[...], x_ref[...],
                            preferred_element_type=jnp.float32)

    @pl.when(t == pl.num_programs(1) - 1)
    def _():
        pooled = acc_ref[...].astype(jnp.bfloat16)               # bf16 matmul operand
        w = jnp.dot(pooled, w2_ref[...], preferred_element_type=jnp.float32)
        w = jax.nn.sigmoid(w + b2_ref[...])                       # bias + sigmoid in f32
        wse_ref[...] = w.astype(wse_ref.dtype)


# ---------------------------------------------------------------------------
# Phase 1 (main): per (batch, HW-tile):  out = (up_tile @ w_se) * relu(x@W1*s+b)
# ---------------------------------------------------------------------------
def _se_main_kernel(x_ref, w1_ref, scale_ref, shift_ref, up_ref, wse_ref, out_ref):
    # SE gate first so blk's (TILE, Cout) f32 buffer is not live across other matmuls.
    gate = jnp.dot(up_ref[...], wse_ref[...], preferred_element_type=jnp.float32)
    blk = jnp.dot(x_ref[...], w1_ref[...], preferred_element_type=jnp.float32)
    blk = jnp.maximum(blk * scale_ref[...] + shift_ref[...], 0.0)
    out_ref[...] = (gate * blk).astype(out_ref.dtype)


# ---------------------------------------------------------------------------
# Wrapper (NHWC, channels-last).
# ---------------------------------------------------------------------------
def se_block_forward(x_nhwc, params, pool_kernel_size, pool_stride, tile_hw=512):
    """x_nhwc: (N, H, W, Cin) float32 -> (N, H, W, Cout) float32."""
    n, h, w, cin = x_nhwc.shape
    cout = params["w1"].shape[1]
    hw = h * w

    # lane-dense channel padding; HW padded to a multiple of a 128-multiple tile.
    cin_p = _round_up(cin, 128)
    cout_p = _round_up(cout, 128)
    tile = min(_round_up(tile_hw, 128), _round_up(hw, 128))
    hw_p = _round_up(hw, tile)
    n_tiles = hw_p // tile

    # static pooling / bilinear operator matrices (exactly match PyTorch)
    ah = _avgpool_matrix(h, pool_kernel_size[0], pool_stride[0])   # (Ph, H)
    aw = _avgpool_matrix(w, pool_kernel_size[1], pool_stride[1])   # (Pw, W)
    ph, pw = ah.shape[0], aw.shape[0]
    p = ph * pw
    p_pad = _round_up(p, 8)
    pool_mat = jnp.asarray(_pad2d(np.kron(ah, aw), p_pad, hw_p), jnp.bfloat16)
    up_mat = jnp.asarray(
        _pad2d(np.kron(_bilinear_matrix(h, ph), _bilinear_matrix(w, pw)), hw_p, p_pad),
        jnp.bfloat16)

    # zero-padded, bf16 matmul operands (f32 accumulation inside the kernels)
    x_flat = jnp.pad(x_nhwc.reshape(n, hw, cin),
                     ((0, 0), (0, hw_p - hw), (0, cin_p - cin))).astype(jnp.bfloat16)
    w1 = jnp.pad(params["w1"], ((0, cin_p - cin), (0, cout_p - cout))).astype(jnp.bfloat16)
    w2 = jnp.pad(params["w2"], ((0, cin_p - cin), (0, cout_p - cout))).astype(jnp.bfloat16)
    scale = jnp.pad(params["bn_scale"], (0, cout_p - cout)).reshape(1, cout_p).astype(jnp.float32)
    shift = jnp.pad(params["bn_shift"], (0, cout_p - cout)).reshape(1, cout_p).astype(jnp.float32)
    b2 = jnp.pad(params["b2"], (0, cout_p - cout)).reshape(1, cout_p).astype(jnp.float32)

    vmem_limit = 48 * 1024 * 1024   # above the 32 MiB scoped default, below v7x physical

    # ---- phase 0: per-image SE gate -----------------------------------------------------
    se_cost = pl.CostEstimate(
        flops=2 * n * p_pad * hw_p * cin_p + 2 * n * p_pad * cin_p * cout_p,
        transcendentals=n * p_pad * cout_p,
        bytes_accessed=x_flat.size * 2 + n * pool_mat.size * 2 + n * p_pad * cout_p * 2,
    )
    w_se = pl.pallas_call(
        _se_weight_kernel,
        out_shape=jax.ShapeDtypeStruct((n, p_pad, cout_p), jnp.bfloat16),
        grid_spec=pltpu.PrefetchScalarGridSpec(
            num_scalar_prefetch=0,
            grid=(n, n_tiles),
            in_specs=[
                pl.BlockSpec((p_pad, tile), lambda b, t: (0, t)),             # pool tile
                pl.BlockSpec((None, tile, cin_p), lambda b, t: (b, t, 0)),    # x tile
                pl.BlockSpec((cin_p, cout_p), lambda b, t: (0, 0)),           # w2
                pl.BlockSpec((1, cout_p), lambda b, t: (0, 0)),               # b2
            ],
            out_specs=pl.BlockSpec((None, p_pad, cout_p), lambda b, t: (b, 0, 0)),
            scratch_shapes=[pltpu.VMEM((p_pad, cin_p), jnp.float32)],
        ),
        compiler_params=pltpu.CompilerParams(
            dimension_semantics=("parallel", "arbitrary"),
            vmem_limit_bytes=vmem_limit,
        ),
        cost_estimate=se_cost,
    )(pool_mat, x_flat, w2, b2)

    # ---- phase 1: main branch + gating, HW-tiled, fully parallel grid --------------------
    main_cost = pl.CostEstimate(
        flops=2 * n * hw_p * cout_p * (cin_p + p_pad),
        transcendentals=0,
        bytes_accessed=(x_flat.size * 2 + n * up_mat.size * 2
                        + n * hw_p * cout_p * 4 + w1.size * 2),
    )
    out_flat = pl.pallas_call(
        _se_main_kernel,
        out_shape=jax.ShapeDtypeStruct((n, hw_p, cout_p), jnp.float32),
        grid_spec=pltpu.PrefetchScalarGridSpec(
            num_scalar_prefetch=0,
            grid=(n, n_tiles),
            in_specs=[
                pl.BlockSpec((None, tile, cin_p), lambda b, t: (b, t, 0)),    # x tile
                pl.BlockSpec((cin_p, cout_p), lambda b, t: (0, 0)),           # w1
                pl.BlockSpec((1, cout_p), lambda b, t: (0, 0)),               # bn scale
                pl.BlockSpec((1, cout_p), lambda b, t: (0, 0)),               # bn shift
                pl.BlockSpec((tile, p_pad), lambda b, t: (t, 0)),             # upsample tile
                pl.BlockSpec((None, p_pad, cout_p), lambda b, t: (b, 0, 0)),  # per-image gate
            ],
            out_specs=pl.BlockSpec((None, tile, cout_p), lambda b, t: (b, t, 0)),
        ),
        compiler_params=pltpu.CompilerParams(
            dimension_semantics=("parallel", "parallel"),
            vmem_limit_bytes=vmem_limit,
        ),
        cost_estimate=main_cost,
    )(x_flat, w1, scale, shift, up_mat, w_se)

    # drop padding, back to (N, H, W, Cout)
    return out_flat[:, :hw, :cout].reshape(n, h, w, cout)


def se_block_forward_nchw(x_nchw, params, pool_kernel_size, pool_stride, tile_hw=512):
    """PyTorch-layout compatibility wrapper.  The two transposes read+write the full
    tensor in HBM; prefer calling se_block_forward with NHWC directly."""
    out = se_block_forward(jnp.transpose(x_nchw, (0, 2, 3, 1)), params,
                           pool_kernel_size, pool_stride, tile_hw)
    return jnp.transpose(out, (0, 3, 1, 2))


# ---------------------------------------------------------------------------
# Deterministic parameter init (shapes follow the module's __init__).
# BN is folded in eval mode (running stats) into a scale/shift pair.
# ---------------------------------------------------------------------------
def init_params(key, cin, cout):
    ks = jax.random.split(key, 7)
    w1 = jax.random.normal(ks[0], (cout, cin), jnp.float32) * 0.2       # Conv2d(cin,cout,1,bias=False)
    gamma = 1.0 + 0.1 * jax.random.normal(ks[1], (cout,), jnp.float32)
    beta = 0.1 * jax.random.normal(ks[2], (cout,), jnp.float32)
    run_mean = 0.1 * jax.random.normal(ks[3], (cout,), jnp.float32)
    run_var = jnp.abs(jax.random.normal(ks[4], (cout,), jnp.float32)) + 0.5
    eps = 1e-5
    bn_scale = gamma / jnp.sqrt(run_var + eps)
    bn_shift = beta - run_mean * bn_scale
    w2 = jax.random.normal(ks[5], (cout, cin), jnp.float32) * 0.2       # Conv2d(cin,cout,1) + bias
    b2 = 0.1 * jax.random.normal(ks[6], (cout,), jnp.float32)
    return {
        "w1": jnp.transpose(w1),      # (Cin, Cout) so the kernel does x @ w1
        "bn_scale": bn_scale,         # (Cout,)
        "bn_shift": bn_shift,         # (Cout,)
        "w2": jnp.transpose(w2),      # (Cin, Cout)
        "b2": b2,                     # (Cout,)
    }


# ---------------------------------------------------------------------------
if __name__ == "__main__":
    # Small shapes consistent with the module (pool kernel must fit the spatial size,
    # so use (8, 8)/(4, 4) instead of the paper defaults (49, 49)/(16, 20)).
    N, CIN, COUT, H, W = 2, 4, 8, 16, 16
    POOL_K, POOL_S = (8, 8), (4, 4)

    key = jax.random.PRNGKey(0)
    kx, kp = jax.random.split(key)
    x = jax.random.normal(kx, (N, H, W, CIN), jnp.float32)      # NHWC (channels-last)
    params = init_params(kp, CIN, COUT)

    # tile_hw=128 so the tiny demo actually exercises multi-tile pipelining
    # (production default is 512 rows per tile).
    fwd = jax.jit(functools.partial(
        se_block_forward, pool_kernel_size=POOL_K, pool_stride=POOL_S, tile_hw=128))
    out = jax.block_until_ready(fwd(x, params))
    assert out.shape == (N, H, W, COUT)

    # Pure-JAX f32 reference of the exact PyTorch math (same NHWC layout, no padding).
    ah = _avgpool_matrix(H, POOL_K[0], POOL_S[0])
    aw = _avgpool_matrix(W, POOL_K[1], POOL_S[1])
    pool_mat = jnp.asarray(np.kron(ah, aw))
    up_mat = jnp.asarray(np.kron(_bilinear_matrix(H, ah.shape[0]),
                                 _bilinear_matrix(W, aw.shape[0])))
    x_flat = x.reshape(N, H * W, CIN)
    blk = jnp.maximum(x_flat @ params["w1"] * params["bn_scale"] + params["bn_shift"], 0.0)
    pooled = jnp.einsum("pk,nkc->npc", pool_mat, x_flat)
    wgt = jax.nn.sigmoid(pooled @ params["w2"] + params["b2"])
    ref = (jnp.einsum("kp,npc->nkc", up_mat, wgt) * blk).reshape(N, H, W, COUT)

    # bf16 matmul operands -> bf16-level tolerance against the f32 reference.
    np.testing.assert_allclose(np.asarray(out), np.asarray(ref), rtol=2e-2, atol=2e-2)

    print("KERNEL_OK")
</pallas_src>

<mosaic_0001>
module attributes {stable_mosaic.version = 11 : i64} {
  func.func @_se_weight_kernel(%arg0: i32, %arg1: i32, %arg2: memref<16x128xbf16, #tpu.memory_space<vmem>>, %arg3: memref<1x128x128xbf16, #tpu.memory_space<vmem>>, %arg4: memref<128x128xbf16, #tpu.memory_space<vmem>>, %arg5: memref<1x128xf32, #tpu.memory_space<vmem>>, %arg6: memref<1x16x128xbf16, #tpu.memory_space<vmem>>, %arg7: memref<16x128xf32, #tpu.memory_space<vmem>>) attributes {dimension_semantics = [#tpu.dimension_semantics<parallel>, #tpu.dimension_semantics<arbitrary>], iteration_bounds = array<i64: 2, 2>, scalar_prefetch = 0 : i64, scratch_operands = 1 : i64, tpu.core_type = #tpu.core_type<tc>, window_params = [{transform_indices = @transform_0, window_bounds = array<i64: 16, 128>}, {transform_indices = @transform_1, window_bounds = array<i64: 1, 128, 128>}, {pipeline_mode = #tpu.pipeline_mode<synchronous>, transform_indices = @transform_2, window_bounds = array<i64: 128, 128>}, {pipeline_mode = #tpu.pipeline_mode<synchronous>, transform_indices = @transform_3, window_bounds = array<i64: 1, 128>}, {transform_indices = @transform_4, window_bounds = array<i64: 1, 16, 128>}]} {
    %c0_i32 = arith.constant 0 : i32
    %0 = arith.cmpi eq, %arg1, %c0_i32 : i32
    %1 = arith.extui %0 : i1 to i32
    %c0_i32_0 = arith.constant 0 : i32
    %2 = arith.cmpi ne, %1, %c0_i32_0 : i32
    scf.if %2 {
      %cst_10 = arith.constant 0.000000e+00 : f32
      %13 = vector.broadcast %cst_10 : f32 to vector<16x128xf32>
      %c0_11 = arith.constant 0 : index
      %c0_12 = arith.constant 0 : index
      %14 = vector.load %arg7[%c0_11, %c0_12] : memref<16x128xf32, #tpu.memory_space<vmem>>, vector<16x128xf32>
      tpu.vector_store %arg7[%c0_11, %c0_12], %13 {strides = array<i32>} : memref<16x128xf32, #tpu.memory_space<vmem>>, vector<16x128xf32>,
    } else {
    }
    %c0 = arith.constant 0 : index
    %c0_1 = arith.constant 0 : index
    %3 = vector.load %arg7[%c0, %c0_1] : memref<16x128xf32, #tpu.memory_space<vmem>>, vector<16x128xf32>
    %c0_2 = arith.constant 0 : index
    %c0_3 = arith.constant 0 : index
    %4 = vector.load %arg2[%c0_2, %c0_3] : memref<16x128xbf16, #tpu.memory_space<vmem>>, vector<16x128xbf16>
    %c0_4 = arith.constant 0 : index
    %c0_5 = arith.constant 0 : index
    %c0_6 = arith.constant 0 : index
    %5 = vector.load %arg3[%c0_4, %c0_5, %c0_6] : memref<1x128x128xbf16, #tpu.memory_space<vmem>>, vector<1x128x128xbf16>
    %6 = vector.shape_cast %5 : vector<1x128x128xbf16> to vector<128x128xbf16>
    %cst = arith.constant dense<0.000000e+00> : vector<16x128xf32>
    %7 = tpu.matmul %4, %6, %cst {dimension_numbers = #tpu.dot_dimension_numbers<[1], [0], [0], [1], [0, 0, 1, 1], [], []>} : vector<16x128xbf16>, vector<128x128xbf16>, vector<16x128xf32> -> vector<16x128xf32>
    %8 = arith.addf %3, %7 : vector<16x128xf32>
    %c0_7 = arith.constant 0 : index
    %c0_8 = arith.constant 0 : index
    %9 = vector.load %arg7[%c0_7, %c0_8] : memref<16x128xf32, #tpu.memory_space<vmem>>, vector<16x128xf32>
    tpu.vector_store %arg7[%c0_7, %c0_8], %8 {strides = array<i32>} : memref<16x128xf32, #tpu.memory_space<vmem>>, vector<16x128xf32>,
    %c1_i32 = arith.constant 1 : i32
    %10 = arith.cmpi eq, %arg1, %c1_i32 : i32
    %11 = arith.extui %10 : i1 to i32
    %c0_i32_9 = arith.constant 0 : i32
    %12 = arith.cmpi ne, %11, %c0_i32_9 : i32
    scf.if %12 {
      %c0_10 = arith.constant 0 : index
      %c0_11 = arith.constant 0 : index
      %13 = vector.load %arg7[%c0_10, %c0_11] : memref<16x128xf32, #tpu.memory_space<vmem>>, vector<16x128xf32>
      %14 = arith.truncf %13 : vector<16x128xf32> to vector<16x128xbf16>
      %c0_12 = arith.constant 0 : index
      %c0_13 = arith.constant 0 : index
      %15 = vector.load %arg4[%c0_12, %c0_13] : memref<128x128xbf16, #tpu.memory_space<vmem>>, vector<128x128xbf16>
      %cst_14 = arith.constant dense<0.000000e+00> : vector<16x128xf32>
      %16 = tpu.matmul %14, %15, %cst_14 {dimension_numbers = #tpu.dot_dimension_numbers<[1], [0], [0], [1], [0, 0, 1, 1], [], []>} : vector<16x128xbf16>, vector<128x128xbf16>, vector<16x128xf32> -> vector<16x128xf32>
      %c0_15 = arith.constant 0 : index
      %c0_16 = arith.constant 0 : index
      %17 = vector.load %arg5[%c0_15, %c0_16] : memref<1x128xf32, #tpu.memory_space<vmem>>, vector<1x128xf32>
      %18 = vector.broadcast %17 : vector<1x128xf32> to vector<16x128xf32>
      %19 = arith.addf %16, %18 : vector<16x128xf32>
      %20 = arith.negf %19 : vector<16x128xf32>
      %21 = math.exp %20 : vector<16x128xf32>
      %cst_17 = arith.constant 1.000000e+00 : f32
      %22 = vector.broadcast %cst_17 : f32 to vector<16x128xf32>
      %23 = arith.addf %22, %21 : vector<16x128xf32>
      %24 = arith.divf %22, %23 : vector<16x128xf32>
      %25 = arith.truncf %24 : vector<16x128xf32> to vector<16x128xbf16>
      %c0_18 = arith.constant 0 : index
      %c0_19 = arith.constant 0 : index
      %c0_20 = arith.constant 0 : index
      %26 = vector.load %arg6[%c0_18, %c0_19, %c0_20] : memref<1x16x128xbf16, #tpu.memory_space<vmem>>, vector<1x16x128xbf16>
      %27 = vector.shape_cast %26 : vector<1x16x128xbf16> to vector<16x128xbf16>
      %28 = vector.shape_cast %25 : vector<16x128xbf16> to vector<1x16x128xbf16>
      tpu.vector_store %arg6[%c0_18, %c0_19, %c0_20], %28 {strides = array<i32>} : memref<1x16x128xbf16, #tpu.memory_space<vmem>>, vector<1x16x128xbf16>,
    } else {
    }
    return
  }
  func.func @transform_0(%arg0: i32, %arg1: i32) -> (i32, i32) {
    %c0_i32 = arith.constant 0 : i32
    %c0_i32_0 = arith.constant 0 : i32
    return %c0_i32, %arg1 : i32, i32
  }
  func.func @transform_1(%arg0: i32, %arg1: i32) -> (i32, i32, i32) {
    %c0_i32 = arith.constant 0 : i32
    %c0_i32_0 = arith.constant 0 : i32
    return %arg0, %arg1, %c0_i32 : i32, i32, i32
  }
  func.func @transform_2(%arg0: i32, %arg1: i32) -> (i32, i32) {
    %c0_i32 = arith.constant 0 : i32
    %c0_i32_0 = arith.constant 0 : i32
    %c0_i32_1 = arith.constant 0 : i32
    return %c0_i32, %c0_i32_0 : i32, i32
  }
  func.func @transform_3(%arg0: i32, %arg1: i32) -> (i32, i32) {
    %c0_i32 = arith.constant 0 : i32
    %c0_i32_0 = arith.constant 0 : i32
    %c0_i32_1 = arith.constant 0 : i32
    return %c0_i32, %c0_i32_0 : i32, i32
  }
  func.func @transform_4(%arg0: i32, %arg1: i32) -> (i32, i32, i32) {
    %c0_i32 = arith.constant 0 : i32
    %c0_i32_0 = arith.constant 0 : i32
    %c0_i32_1 = arith.constant 0 : i32
    return %arg0, %c0_i32, %c0_i32_0 : i32, i32, i32
  }
}

module attributes {stable_mosaic.version = 11 : i64} {
  func.func @_se_main_kernel(%arg0: i32, %arg1: i32, %arg2: memref<1x128x128xbf16, #tpu.memory_space<vmem>>, %arg3: memref<128x128xbf16, #tpu.memory_space<vmem>>, %arg4: memref<1x128xf32, #tpu.memory_space<vmem>>, %arg5: memref<1x128xf32, #tpu.memory_space<vmem>>, %arg6: memref<128x16xbf16, #tpu.memory_space<vmem>>, %arg7: memref<1x16x128xbf16, #tpu.memory_space<vmem>>, %arg8: memref<1x128x128xf32, #tpu.memory_space<vmem>>) attributes {dimension_semantics = [#tpu.dimension_semantics<parallel>, #tpu.dimension_semantics<parallel>], iteration_bounds = array<i64: 2, 2>, scalar_prefetch = 0 : i64, scratch_operands = 0 : i64, tpu.core_type = #tpu.core_type<tc>, window_params = [{transform_indices = @transform_0, window_bounds = array<i64: 1, 128, 128>}, {pipeline_mode = #tpu.pipeline_mode<synchronous>, transform_indices = @transform_1, window_bounds = array<i64: 128, 128>}, {pipeline_mode = #tpu.pipeline_mode<synchronous>, transform_indices = @transform_2, window_bounds = array<i64: 1, 128>}, {pipeline_mode = #tpu.pipeline_mode<synchronous>, transform_indices = @transform_3, window_bounds = array<i64: 1, 128>}, {transform_indices = @transform_4, window_bounds = array<i64: 128, 16>}, {transform_indices = @transform_5, window_bounds = array<i64: 1, 16, 128>}, {transform_indices = @transform_6, window_bounds = array<i64: 1, 128, 128>}]} {
    %c0 = arith.constant 0 : index
    %c0_0 = arith.constant 0 : index
    %0 = vector.load %arg6[%c0, %c0_0] : memref<128x16xbf16, #tpu.memory_space<vmem>>, vector<128x16xbf16>
    %c0_1 = arith.constant 0 : index
    %c0_2 = arith.constant 0 : index
    %c0_3 = arith.constant 0 : index
    %1 = vector.load %arg7[%c0_1, %c0_2, %c0_3] : memref<1x16x128xbf16, #tpu.memory_space<vmem>>, vector<1x16x128xbf16>
    %2 = vector.shape_cast %1 : vector<1x16x128xbf16> to vector<16x128xbf16>
    %cst = arith.constant dense<0.000000e+00> : vector<128x128xf32>
    %3 = tpu.matmul %0, %2, %cst {dimension_numbers = #tpu.dot_dimension_numbers<[1], [0], [0], [1], [0, 0, 1, 1], [], []>} : vector<128x16xbf16>, vector<16x128xbf16>, vector<128x128xf32> -> vector<128x128xf32>
    %c0_4 = arith.constant 0 : index
    %c0_5 = arith.constant 0 : index
    %c0_6 = arith.constant 0 : index
    %4 = vector.load %arg2[%c0_4, %c0_5, %c0_6] : memref<1x128x128xbf16, #tpu.memory_space<vmem>>, vector<1x128x128xbf16>
    %5 = vector.shape_cast %4 : vector<1x128x128xbf16> to vector<128x128xbf16>
    %c0_7 = arith.constant 0 : index
    %c0_8 = arith.constant 0 : index
    %6 = vector.load %arg3[%c0_7, %c0_8] : memref<128x128xbf16, #tpu.memory_space<vmem>>, vector<128x128xbf16>
    %cst_9 = arith.constant dense<0.000000e+00> : vector<128x128xf32>
    %7 = tpu.matmul %5, %6, %cst_9 {dimension_numbers = #tpu.dot_dimension_numbers<[1], [0], [0], [1], [0, 0, 1, 1], [], []>} : vector<128x128xbf16>, vector<128x128xbf16>, vector<128x128xf32> -> vector<128x128xf32>
    %c0_10 = arith.constant 0 : index
    %c0_11 = arith.constant 0 : index
    %8 = vector.load %arg4[%c0_10, %c0_11] : memref<1x128xf32, #tpu.memory_space<vmem>>, vector<1x128xf32>
    %9 = vector.broadcast %8 : vector<1x128xf32> to vector<128x128xf32>
    %10 = arith.mulf %7, %9 : vector<128x128xf32>
    %c0_12 = arith.constant 0 : index
    %c0_13 = arith.constant 0 : index
    %11 = vector.load %arg5[%c0_12, %c0_13] : memref<1x128xf32, #tpu.memory_space<vmem>>, vector<1x128xf32>
    %12 = vector.broadcast %11 : vector<1x128xf32> to vector<128x128xf32>
    %13 = arith.addf %10, %12 : vector<128x128xf32>
    %cst_14 = arith.constant 0.000000e+00 : f32
    %14 = vector.broadcast %cst_14 : f32 to vector<128x128xf32>
    %15 = arith.maximumf %13, %14 : vector<128x128xf32>
    %16 = arith.mulf %3, %15 : vector<128x128xf32>
    %c0_15 = arith.constant 0 : index
    %c0_16 = arith.constant 0 : index
    %c0_17 = arith.constant 0 : index
    %17 = vector.load %arg8[%c0_15, %c0_16, %c0_17] : memref<1x128x128xf32, #tpu.memory_space<vmem>>, vector<1x128x128xf32>
    %18 = vector.shape_cast %17 : vector<1x128x128xf32> to vector<128x128xf32>
    %19 = vector.shape_cast %16 : vector<128x128xf32> to vector<1x128x128xf32>
    tpu.vector_store %arg8[%c0_15, %c0_16, %c0_17], %19 {strides = array<i32>} : memref<1x128x128xf32, #tpu.memory_space<vmem>>, vector<1x128x128xf32>,
    return
  }
  func.func @transform_0(%arg0: i32, %arg1: i32) -> (i32, i32, i32) {
    %c0_i32 = arith.constant 0 : i32
    %c0_i32_0 = arith.constant 0 : i32
    return %arg0, %arg1, %c0_i32 : i32, i32, i32
  }
  func.func @transform_1(%arg0: i32, %arg1: i32) -> (i32, i32) {
    %c0_i32 = arith.constant 0 : i32
    %c0_i32_0 = arith.constant 0 : i32
    %c0_i32_1 = arith.constant 0 : i32
    return %c0_i32, %c0_i32_0 : i32, i32
  }
  func.func @transform_2(%arg0: i32, %arg1: i32) -> (i32, i32) {
    %c0_i32 = arith.constant 0 : i32
    %c0_i32_0 = arith.constant 0 : i32
    %c0_i32_1 = arith.constant 0 : i32
    return %c0_i32, %c0_i32_0 : i32, i32
  }
  func.func @transform_3(%arg0: i32, %arg1: i32) -> (i32, i32) {
    %c0_i32 = arith.constant 0 : i32
    %c0_i32_0 = arith.constant 0 : i32
    %c0_i32_1 = arith.constant 0 : i32
    return %c0_i32, %c0_i32_0 : i32, i32
  }
  func.func @transform_4(%arg0: i32, %arg1: i32) -> (i32, i32) {
    %c0_i32 = arith.constant 0 : i32
    %c0_i32_0 = arith.constant 0 : i32
    return %arg1, %c0_i32 : i32, i32
  }
  func.func @transform_5(%arg0: i32, %arg1: i32) -> (i32, i32, i32) {
    %c0_i32 = arith.constant 0 : i32
    %c0_i32_0 = arith.constant 0 : i32
    %c0_i32_1 = arith.constant 0 : i32
    return %arg0, %c0_i32, %c0_i32_0 : i32, i32, i32
  }
  func.func @transform_6(%arg0: i32, %arg1: i32) -> (i32, i32, i32) {
    %c0_i32 = arith.constant 0 : i32
    %c0_i32_0 = arith.constant 0 : i32
    return %arg0, %arg1, %c0_i32 : i32, i32, i32
  }
}

</mosaic_0001>

<bundles_post_ra>
// kernel: se_block_forward.2
= control target key start
LH: loop header
LB: loop body
LE: loop exit
PB: predicated region body
PF: predicated region fallthrough
CT: control target
= control target key end

     0   :  { %s925_s15 = smov 0   ;;  %s927_s16 = smov 0   ;;  %s1062_s0 = inlined_call_operand.vmem [shape: bf16[16,256], index: 0, kind: input, shape index: {}]   ;;  %s1063_s1 = inlined_call_operand.vmem [shape: bf16[2,256,128], index: 1, kind: input, shape index: {}]   ;;  %s1064_s2 = inlined_call_operand.vmem [shape: bf16[128,128], index: 2, kind: input, shape index: {}]   ;;  %s1065_s3 = inlined_call_operand.vmem [shape: f32[1,128], index: 3, kind: input, shape index: {}]   ;;  %s1066_s4 = inlined_call_operand.vmem [shape: bf16[2,16,128], index: 4, kind: output, shape index: {}]  }
   0x1   :  { %s929_s17 = smov 0   ;;  %s931_s18 = smov 0  }
   0x2   :  { %s933_s19 = smov 0   ;;  %s935_s20 = smov 0  }
   0x3   :  { %s937_s21 = smov 0  }
   0x4 LB: > { %s23_s22 = sadd.s32 1, %s885_s19  ;;  %s26_s23 = sadd.s32 1, %s889_s20  ;;  %s893_s21 = sphi %s937_s21, %s14_s21   ;;  %s889_s20 = sphi %s935_s20, %s1072_s20   ;;  %s885_s19 = sphi %s933_s19, %s1071_s19   ;;  %s881_s18 = sphi %s931_s18, %s1070_s18   ;;  %s877_s17 = sphi %s929_s17, %s1069_s17   ;;  %s873_s16 = sphi %s927_s16, %s1068_s16   ;;  %s869_s15 = sphi %s925_s15, %s1067_s15  }
   0x5   : > { %p24_p0 = scmp.ge.s32.totalorder %s23_s22, 2  ;;  %s33_s24 = sadd.s32 1, %s873_s16 }
   0x6   : > { %p40_p1 = scmp.ne.s32.totalorder %s873_s16, %s869_s15  ;;  %p41_p2 = scmp.eq.s32.totalorder %s893_s21, 0 }
   0x7   : > { %s1074_s22 = smov (%p24_p0, %s23_s22), 0  ;;  %s1076_s23 = smov (!%p24_p0, %s26_s23), %s889_s20 }
   0x8   : > { %s30_s25 = ssub.s32 %s885_s19, %s1074_s22  ;;  %p42_p3 = por %p41_p2, %p40_p1 }
   0x9   : > { %p28_p4 = scmp.ge.s32.totalorder %s1076_s23, 2  ;;  %p31_p5 = scmp.eq.s32.totalorder %s30_s25, 0 }
   0xa   : > { %p651_p6 = scmp.ge.s32.totalorder %s893_s21, 4 }
   0xb   : > { %s1078_s23 = smov (%p28_p4, %s1076_s23), 0 }
   0xc   : > { %s974_s26 = scalar_select %p31_p5, %s873_s16, %s33_s24  }
   0xd   : > { %168 = sbr.rel (%p651_p6) target bundleno = 27 (0x1b), region = 24 }
  0x14   : > { %171 = sbr.rel (!%p42_p3) target bundleno = 27 (0x1b), region = 28  ;;  %s173_s27 = sand.u32 (%p42_p3), 1, %s873_s16  }
  0x15   : > { %s653_s28 = sshll.u32 (%p42_p3), %s885_s19, 2  ;;  %s652_s29 = sshll.u32 (%p42_p3), %s173_s27, 3 }
  0x16   : > { %s177_s6 = scalar_lea.vmem (%p42_p3), %s1062_s0, %s653_s28  ;;  %s175_s7 = scalar_lea.vmem (%p42_p3), [#allocation3], %s652_s29 }
  0x17   : > { %v193_v0 = vld [vmem:[%s177_s6] sm:$0xf] (%p42_p3)  ;;  %v195_v1 = vld [vmem:[%s177_s6 + $0x8] sm:$0xf] (%p42_p3) }
  0x18   : > { %194 = vst [vmem:[%s175_s7] sm:$0xf] (%p42_p3), %v193_v0  ;;  %196 = vst [vmem:[%s175_s7 + $0x4] sm:$0xf] (%p42_p3), %v195_v1 }
  0x1b PF: > { %p654_p7 = scmp.ge.s32.totalorder %s893_s21, 1  ;;  %p235_p8 = scmp.lt.s32.totalorder %s893_s21, 5 }
  0x1d   : > { %p236_p9 = pnand %p654_p7, %p235_p8 }
  0x1e   : > { %s242_s8 = sand.u32 (!%p236_p9), 1, %s869_s15   ;;  %s656_s9 = sshll.u32 (!%p236_p9), %s877_s17, 4 }
  0x1f   : > { %239 = sbr.rel (%p236_p9) target bundleno = 552 (0x228), region = 73  ;;  %s986_s10 = sshll.u32 (!%p236_p9), %s242_s8, 3 }
  0x20   : > { %p277_p10 = scmp.lt.s32.totalorder (!%p236_p9), %s881_s18, 1  ;;  %p279_p11 = scmp.lt.s32.totalorder (!%p236_p9), %s656_s9, 31 }
  0x21   : > { %s244_s30 = scalar_lea.vmem (!%p236_p9), [#allocation3], %s986_s10  ;;  %p661_p12 = scmp.ne.s32.totalorder (!%p236_p9), %s877_s17, 0 }
  0x26   : > { %s1080_s18 = smov (!%p277_p10, %s881_s18), 1  ;;  %s1082_s9 = smov (!%p279_p11, %s656_s9), 31 }
  0x27   : > { %s657_s11 = sshll.u32 %s1080_s18, 5  ;;  %s687_s12 = sshll.u32 %s1080_s18, 3  ;;  %v895_v2 = vmov (!%p661_p12), 0.0  }
  0x28   : > { %s282_s13 = sadd.s32 %s657_s11, %s1082_s9  ;;  %s993_s25 = scalar_lea.vmem %s1066_s4, %s687_s12  ;;  %296 = vst [vmem:[#allocation2] sm:$0xff] (!%p661_p12), %v895_v2  ;;  %297 = vst [vmem:[#allocation2 + $0x8] sm:$0xff] (!%p661_p12), %v895_v2 }
  0x29   : > { %s658_s27 = sshll.u32 %s282_s13, 2  ;;  %295 = sbr.rel (%p661_p12) target bundleno = 48 (0x30), region = 81 }
  0x2a   : > { %s998_s15 = scalar_lea.vmem %s1063_s1, %s658_s27 }
  0x30 PF: > { %v814_v3 = vld [vmem:[%s998_s15] sm:$0xff]   ;;  %v896_v4 = vmov 0.0   ;;  %v815_v5 = vld [vmem:[%s998_s15 + $0x8] sm:$0xff]   ;;  %vm897_vm0 = vmmov 0   ;;  %v816_v6 = vld [vmem:[%s998_s15 + $0x10] sm:$0xff]   ;;  %p671_p13 = scmp.ne.s32.totalorder %s877_s17, 1 }
  0x31   : > { %713 = vmatprep.subr.bf16.mxu0 %v896_v4  ;;  %729 = vmatprep.mubr.msk.bf16.mxu0 %vm897_vm0, %v896_v4  ;;  %v817_v7 = vld [vmem:[%s998_s15 + $0x18] sm:$0xff]   ;;  %v818_v8 = vld [vmem:[%s998_s15 + $0x20] sm:$0xff]   ;;  %v819_v9 = vld [vmem:[%s998_s15 + $0x28] sm:$0xff]   ;;  %v898_v22 = vmov (!%p671_p13), 0.0   ;;  %vm899_vm1 = vmmov (!%p671_p13), 0  }
  0x32   : > { %714 = vmatpush3.bf16.msra.mxu0 %v814_v3  ;;  %v820_v10 = vld [vmem:[%s998_s15 + $0x30] sm:$0xff]   ;;  %v821_v11 = vld [vmem:[%s998_s15 + $0x38] sm:$0xff]   ;;  %v298_v13 = vld [vmem:[#allocation2] sm:$0xff] }
  0x33   : > { %715 = vmatprep.subr.bf16.mxu0 %v896_v4  ;;  %v822_v12 = vld [vmem:[%s244_s30] sm:$0xff]   ;;  %v299_v15 = vld [vmem:[#allocation2 + $0x8] sm:$0xff]  ;;  %v823_v21 = vld [vmem:[%s1064_s2] sm:$0xff] (!%p671_p13)  }
  0x34   : > { %v824_v23 = vld [vmem:[%s1064_s2 + $0x8] sm:$0xff] (!%p671_p13)   ;;  %v825_v24 = vld [vmem:[%s1064_s2 + $0x10] sm:$0xff] (!%p671_p13)   ;;  %v826_v25 = vld [vmem:[%s1064_s2 + $0x18] sm:$0xff] (!%p671_p13)  }
  0x35   : > { %v827_v26 = vld [vmem:[%s1064_s2 + $0x20] sm:$0xff] (!%p671_p13)   ;;  %v828_v27 = vld [vmem:[%s1064_s2 + $0x28] sm:$0xff] (!%p671_p13)   ;;  %v829_v28 = vld [vmem:[%s1064_s2 + $0x30] sm:$0xff] (!%p671_p13)  }
  0x36   : > { %716 = vmatpush3.bf16.msra.mxu0 %v815_v5  ;;  %v830_v29 = vld [vmem:[%s1064_s2 + $0x38] sm:$0xff] (!%p671_p13)   ;;  %v672_v33 = vld [vmem:[%s1065_s3] ss:$0 sm:$0xff] (!%p671_p13) }
  0x37   : > { %717 = vmatprep.subr.bf16.mxu0 %v896_v4 }
  0x3a   : > { %718 = vmatpush3.bf16.msra.mxu0 %v816_v6 }
  0x3b   : > { %719 = vmatprep.subr.bf16.mxu0 %v896_v4 }
  0x3e   : > { %720 = vmatpush3.bf16.msra.mxu0 %v817_v7 }
  0x3f   : > { %721 = vmatprep.subr.bf16.mxu0 %v896_v4 }
  0x42   : > { %722 = vmatpush3.bf16.msra.mxu0 %v818_v8 }
  0x43   : > { %723 = vmatprep.subr.bf16.mxu0 %v896_v4 }
  0x46   : > { %724 = vmatpush3.bf16.msra.mxu0 %v819_v9 }
  0x47   : > { %725 = vmatprep.subr.bf16.mxu0 %v896_v4 }
  0x4a   : > { %726 = vmatpush3.bf16.msra.mxu0 %v820_v10 }
  0x4b   : > { %727 = vmatprep.subr.bf16.mxu0 %v896_v4 }
  0x4e   : > { %728 = vmatpush3.bf16.msra.mxu0 %v821_v11 }
  0x4f   : > { %733 = vmatprep.subr.bf16.mxu0 (!%p671_p13), %v898_v22 }
  0x51   : > { %730 = vmatmul.mubr.bf16.vlgmr.msra.gmra.mrb[0].mxu0 %v822_v12 }
  0x52   : > { %734 = vmatpush3.bf16.msra.mxu0 (!%p671_p13), %v823_v21  ;;  %749 = vmatprep.mubr.msk.bf16.mxu0 (!%p671_p13), %vm899_vm1, %v898_v22 }
  0x53   : > { %735 = vmatprep.subr.bf16.mxu0 (!%p671_p13), %v898_v22 }
  0x56   : > { %736 = vmatpush3.bf16.msra.mxu0 (!%p671_p13), %v824_v23 }
  0x57   : > { %737 = vmatprep.subr.bf16.mxu0 (!%p671_p13), %v898_v22 }
  0x5a   : > { %738 = vmatpush3.bf16.msra.mxu0 (!%p671_p13), %v825_v24 }
  0x5b   : > { %739 = vmatprep.subr.bf16.mxu0 (!%p671_p13), %v898_v22 }
  0x5e   : > { %740 = vmatpush3.bf16.msra.mxu0 (!%p671_p13), %v826_v25 }
  0x5f   : > { %741 = vmatprep.subr.bf16.mxu0 (!%p671_p13), %v898_v22 }
  0x62   : > { %742 = vmatpush3.bf16.msra.mxu0 (!%p671_p13), %v827_v26 }
  0x63   : > { %743 = vmatprep.subr.bf16.mxu0 (!%p671_p13), %v898_v22 }
  0x66   : > { %744 = vmatpush3.bf16.msra.mxu0 (!%p671_p13), %v828_v27 }
  0x67   : > { %745 = vmatprep.subr.bf16.mxu0 (!%p671_p13), %v898_v22 }
  0x6a   : > { %746 = vmatpush3.bf16.msra.mxu0 (!%p671_p13), %v829_v28 }
  0x6b   : > { %747 = vmatprep.subr.bf16.mxu0 (!%p671_p13), %v898_v22 }
  0x6e   : > { %748 = vmatpush3.bf16.msra.mxu0 (!%p671_p13), %v830_v29 }
 0x123   : > { %420 = sbr.rel (%p671_p13) target bundleno = 552 (0x228), region = 85 }
 0x124   : > { %v406_v14 = vpop.f32.mrb[0].mxu0 }
 0x125   : > { %v413_v16 = vadd.f32 %v406_v14, %v298_v13  ;;  %v731_v17 = vpop.f32.mrb[1].mxu0 }
 0x126   : > { %v409_v18 = vpop.f32.mrb[2].mxu0 }
 0x127   : > { %415 = vst [vmem:[#allocation2] sm:$0xff] %v413_v16  ;;  %v414_v19 = vadd.f32 %v409_v18, %v299_v15  ;;  %v732_v20 = vpop.f32.mrb[3].mxu0 }
 0x129   : > { %416 = vst [vmem:[#allocation2 + $0x8] sm:$0xff] %v414_v19 }
 0x12e   : > { %v421_v30 = vld [vmem:[#allocation2] sm:$0xff] }
 0x130   : > { %v422_v31 = vld [vmem:[#allocation2 + $0x8] sm:$0xff] }
 0x131   : > { %v423_v32 = vpack.c.bf16 %v422_v31, %v421_v30 }
 0x133   : > { %750 = vmatmul.mubr.bf16.vlgmr.msra.gmra.mrb[0].mxu0 %v423_v32 }
 0x206   : > { %v529_v34 = vpop.f32.mrb[0].mxu0 }
 0x207   : > { %v530_v35 = vadd.f32 %v672_v33, %v529_v34  ;;  %v751_v36 = vpop.f32.mrb[1].mxu0 }
 0x208   : > { %v532_v37 = vpop.f32.mrb[2].mxu0 }
 0x209   : > { %v681_v38 = vmul.f32 -1.442695, %v530_v35  ;;  %v533_v39 = vadd.f32 %v672_v33, %v532_v37  ;;  %v752_v40 = vpop.f32.mrb[3].mxu0 }
 0x20b   : > { %831 = vpow2.f32 %v681_v38  ;;  %v682_v41 = vmul.f32 -1.442695, %v533_v39 }
 0x20d   : > { %833 = vpow2.f32 %v682_v41 }
 0x215   : > { %v832_v42 = vpop.eup %831 }
 0x216   : > { %v542_v43 = vadd.f32 1.0, %v832_v42 }
 0x217   : > { %v834_v44 = vpop.eup %833 }
 0x218   : > { %v543_v45 = vadd.f32 1.0, %v834_v44  ;;  %835 = vrcp.f32 %v542_v43 }
 0x21a   : > { %837 = vrcp.f32 %v543_v45 }
 0x222   : > { %v836_v46 = vpop.eup %835 }
 0x224   : > { %v838_v47 = vpop.eup %837 }
 0x225   : > { %v693_v48 = vpack.c.bf16 %v838_v47, %v836_v46 }
 0x227   : > { %694 = vst [vmem:[%s993_s25] sm:$0xff] %v693_v48  }
 0x228 PF: > { %s14_s21 = sadd.s32 1, %s893_s21   ;;  %s1067_s15 = smov %s873_s16 }
 0x229   : > { %p11_p0 = scmp.ge.s32.totalorder %s14_s21, 6   ;;  %s1068_s16 = smov %s974_s26 }
 0x22a   : > { %s1069_s17 = smov %s885_s19  ;;  %s1070_s18 = smov %s889_s20 }
 0x22b   : > { %s1071_s19 = smov %s1074_s22  ;;  %s1072_s20 = smov %s1078_s23 }
 0x22c   :  { %13 = sbr.rel (!%p11_p0) target bundleno = 4 (0x4), region = 123 }

// kernel: se_block_forward.3
= control target key start
LH: loop header
LB: loop body
LE: loop exit
PB: predicated region body
PF: predicated region fallthrough
CT: control target
= control target key end

     0   :  { %s1237_s21 = smov 0   ;;  %s1239_s22 = smov 0   ;;  %s1437_s0 = inlined_call_operand.vmem [shape: bf16[2,256,128], index: 0, kind: input, shape index: {}]   ;;  %s1438_s1 = inlined_call_operand.vmem [shape: bf16[128,128], index: 1, kind: input, shape index: {}]   ;;  %s1439_s2 = inlined_call_operand.vmem [shape: f32[1,128], index: 2, kind: input, shape index: {}]   ;;  %s1440_s3 = inlined_call_operand.vmem [shape: f32[1,128], index: 3, kind: input, shape index: {}]   ;;  %s1441_s4 = inlined_call_operand.vmem [shape: bf16[256,16], index: 4, kind: input, shape index: {}]   ;;  %s1442_s5 = inlined_call_operand.vmem [shape: bf16[2,16,128], index: 5, kind: input, shape index: {}]   ;;  %s1443_s6 = inlined_call_operand.vmem [shape: f32[2,256,128], index: 6, kind: output, shape index: {}]  }
   0x1   :  { %s1241_s23 = smov 0   ;;  %s1243_s24 = smov 0  }
   0x2   :  { %s1245_s25 = smov 0  }
   0x3 LB: > { %s25_s26 = sadd.s32 1, %s1192_s23  ;;  %s28_s27 = sadd.s32 1, %s1196_s24  ;;  %s1200_s25 = sphi %s1245_s25, %s16_s25   ;;  %s1196_s24 = sphi %s1243_s24, %s1447_s24   ;;  %s1192_s23 = sphi %s1241_s23, %s1446_s23   ;;  %s1188_s22 = sphi %s1239_s22, %s1445_s22   ;;  %s1184_s21 = sphi %s1237_s21, %s1444_s21  }
   0x4   : > { %p26_p0 = scmp.ge.s32.totalorder %s25_s26, 2  ;;  %p957_p1 = scmp.ge.s32.totalorder %s1200_s25, 1 }
   0x5   : > { %p254_p2 = scmp.lt.s32.totalorder %s1200_s25, 5 }
   0x6   : > { %s1449_s26 = smov (%p26_p0, %s25_s26), 0  ;;  %s1451_s27 = smov (!%p26_p0, %s28_s27), %s1196_s24 }
   0x7   : > { %p255_p3 = pnand %p957_p1, %p254_p2  ;;  %p30_p4 = scmp.ge.s32.totalorder %s1451_s27, 2 }
   0x8   : > { %v1137_v0 = vld [vmem:[%s1438_s1] sm:$0xff] (!%p255_p3)   ;;  %s958_s30 = sshll.u32 (!%p255_p3), %s1184_s21, 4  ;;  %v1138_v1 = vld [vmem:[%s1438_s1 + $0x8] sm:$0xff] (!%p255_p3)   ;;  %p303_p5 = scmp.lt.s32.totalorder (!%p255_p3), %s1188_s22, 1  ;;  %v1140_v2 = vld [vmem:[%s1438_s1 + $0x10] sm:$0xff] (!%p255_p3)   ;;  %vm398_vm0 = vcmask (!%p255_p3), 130048  }
   0x9   : > { %s1453_s27 = smov (%p30_p4, %s1451_s27), 0  ;;  %258 = sbr.rel (%p255_p3) target bundleno = 284 (0x11c), region = 44 }
   0xa   : > { %1081 = vmatprep.subr.bf16.mxu1 (!%p255_p3), %v1137_v0  ;;  %p305_p6 = scmp.lt.s32.totalorder (!%p255_p3), %s958_s30, 31  ;;  %v1143_v3 = vld [vmem:[%s1438_s1 + $0x18] sm:$0xff] (!%p255_p3)   ;;  %v1144_v7 = vld [vmem:[%s1438_s1 + $0x20] sm:$0xff] (!%p255_p3)   ;;  %v1147_v9 = vld [vmem:[%s1438_s1 + $0x28] sm:$0xff] (!%p255_p3)  }
   0xb   : > { %1089 = vmatpush3.bf16.msra.mxu1 (!%p255_p3), %v1137_v0  ;;  %v1148_v12 = vld [vmem:[%s1438_s1 + $0x30] sm:$0xff] (!%p255_p3)   ;;  %v1151_v14 = vld [vmem:[%s1438_s1 + $0x38] sm:$0xff] (!%p255_p3)   ;;  %v1342_v35 = vld [vmem:[%s1439_s2] ss:$0 sm:$0xff] (!%p255_p3) }
   0xc   : > { %1082 = vmatprep.subr.bf16.mxu1 (!%p255_p3), %v1138_v1  ;;  %v1349_v39 = vld [vmem:[%s1440_s3] ss:$0 sm:$0xff] (!%p255_p3) }
   0xf   : > { %1090 = vmatpush3.bf16.msra.mxu1 (!%p255_p3), %v1138_v1 }
  0x10   : > { %s1455_s22 = smov (!%p303_p5, %s1188_s22), 1  ;;  %s1457_s30 = smov (!%p305_p6, %s958_s30), 31  ;;  %1083 = vmatprep.subr.bf16.mxu1 %v1140_v2 }
  0x11   : > { %s959_s11 = sshll.u32 %s1455_s22, 5  ;;  %s1005_s12 = sshll.u32 %s1455_s22, 3 }
  0x12   : > { %s962_s13 = sshll.u32 %s1457_s30, 2  ;;  %s1276_s14 = sadd.s32 %s959_s11, %s1457_s30 }
  0x13   : > { %s1281_s17 = scalar_lea.vmem %s1441_s4, %s962_s13  ;;  %s322_s22 = scalar_lea.vmem %s1442_s5, %s1005_s12  ;;  %1091 = vmatpush3.bf16.msra.mxu1 %v1140_v2 }
  0x14   : > { %v1141_v4 = vld [vmem:[%s1281_s17] sm:$0xff]   ;;  %s960_s28 = sshll.u32 %s1276_s14, 2  ;;  %v1142_v6 = vld [vmem:[%s1281_s17 + $0x8] sm:$0xff]   ;;  %1084 = vmatprep.subr.bf16.mxu1 %v1143_v3  ;;  %v1145_v8 = vld [vmem:[%s1281_s17 + $0x10] sm:$0xff]   ;;  %s967_s21 = sshll.u32 %s1276_s14, 3 }
  0x15   : > { %v1139_v5 = vld [vmem:[%s322_s22] sm:$0xff]   ;;  %1033 = vmatprep.mubr.msk.bf16.mxu0 %vm398_vm0, %v1141_v4  ;;  %s1299_s9 = scalar_lea.vmem %s1437_s0, %s960_s28  ;;  %v1146_v11 = vld [vmem:[%s1281_s17 + $0x18] sm:$0xff]   ;;  %v1150_v15 = vld [vmem:[%s1281_s17 + $0x28] sm:$0xff]   ;;  %s1364_s29 = scalar_lea.vmem %s1443_s6, %s967_s21 }
  0x16   : > { %1031 = vmatprep.subr.bf16.mxu0 %v1139_v5  ;;  %v1152_v10 = vld [vmem:[%s1299_s9 + $0x10] sm:$0xff]   ;;  %v1149_v13 = vld [vmem:[%s1281_s17 + $0x20] sm:$0xff]   ;;  %v1153_v17 = vld [vmem:[%s1299_s9 + $0x18] sm:$0xff]  }
  0x17   : > { %1032 = vmatpush3.bf16.msra.mxu0 %v1139_v5  ;;  %1092 = vmatpush3.bf16.msra.mxu1 %v1143_v3  ;;  %v1154_v16 = vld [vmem:[%s1281_s17 + $0x30] sm:$0xff]   ;;  %v1156_v18 = vld [vmem:[%s1299_s9 + $0x20] sm:$0xff]   ;;  %v1155_v19 = vld [vmem:[%s1281_s17 + $0x38] sm:$0xff]  }
  0x18   : > { %1049 = vmatprep.subr.bf16.mxu0 %v1137_v0  ;;  %1085 = vmatprep.subr.bf16.mxu1 %v1144_v7  ;;  %v1158_v20 = vld [vmem:[%s1299_s9] sm:$0xff]   ;;  %v1157_v21 = vld [vmem:[%s1299_s9 + $0x28] sm:$0xff]   ;;  %v1160_v22 = vld [vmem:[%s1299_s9 + $0x30] sm:$0xff]  }
  0x19   : > { %1069 = vmatprep.mubr.bf16.mxu1 %v1152_v10  ;;  %v1159_v23 = vld [vmem:[%s1299_s9 + $0x8] sm:$0xff]   ;;  %v1161_v24 = vld [vmem:[%s1299_s9 + $0x38] sm:$0xff]  }
  0x1a   : > { %1034 = vmatmul.mubr.msk.bf16.vlgmr.msra.gmra.mrb[0].mxu0 %vm398_vm0, %v1142_v6 }
  0x1b   : > { %1050 = vmatpush3.bf16.msra.mxu0 %v1137_v0  ;;  %1037 = vmatprep.mubr.msk.bf16.mxu0 %vm398_vm0, %v1145_v8 }
  0x1c   : > { %1051 = vmatprep.subr.bf16.mxu0 %v1138_v1  ;;  %1093 = vmatpush3.bf16.msra.mxu1 %v1144_v7 }
  0x1d   : > { %1086 = vmatprep.subr.bf16.mxu1 %v1147_v9 }
  0x1f   : > { %1052 = vmatpush3.bf16.msra.mxu0 %v1138_v1 }
  0x20   : > { %1053 = vmatprep.subr.bf16.mxu0 %v1140_v2  ;;  %1094 = vmatpush3.bf16.msra.mxu1 %v1147_v9 }
  0x21   : > { %1087 = vmatprep.subr.bf16.mxu1 %v1148_v12 }
  0x22   : > { %1038 = vmatmul.mubr.msk.bf16.gmra.mrb[4].mxu0 %vm398_vm0, %v1146_v11 }
  0x23   : > { %1054 = vmatpush3.bf16.msra.mxu0 %v1140_v2  ;;  %1041 = vmatprep.mubr.msk.bf16.mxu0 %vm398_vm0, %v1149_v13 }
  0x24   : > { %1055 = vmatprep.subr.bf16.mxu0 %v1143_v3  ;;  %1095 = vmatpush3.bf16.msra.mxu1 %v1148_v12 }
  0x25   : > { %1088 = vmatprep.subr.bf16.mxu1 %v1151_v14 }
  0x27   : > { %1056 = vmatpush3.bf16.msra.mxu0 %v1143_v3 }
  0x28   : > { %1057 = vmatprep.subr.bf16.mxu0 %v1144_v7  ;;  %1096 = vmatpush3.bf16.msra.mxu1 %v1151_v14 }
  0x2a   : > { %1042 = vmatmul.mubr.msk.bf16.gmra.mrb[8].mxu0 %vm398_vm0, %v1150_v15 }
  0x2b   : > { %1058 = vmatpush3.bf16.msra.mxu0 %v1144_v7  ;;  %1045 = vmatprep.mubr.msk.bf16.mxu0 %vm398_vm0, %v1154_v16 }
  0x2c   : > { %1059 = vmatprep.subr.bf16.mxu0 %v1147_v9  ;;  %1070 = vmatmul.mubr.bf16.vlgmr.msra.gmra.mrb[0].mxu1 %v1153_v17 }
  0x2d   : > { %1073 = vmatprep.mubr.bf16.mxu1 %v1156_v18 }
  0x2f   : > { %1060 = vmatpush3.bf16.msra.mxu0 %v1147_v9 }
  0x30   : > { %1061 = vmatprep.subr.bf16.mxu0 %v1148_v12 }
  0x32   : > { %1046 = vmatmul.mubr.msk.bf16.gmra.mrb[12].mxu0 %vm398_vm0, %v1155_v19 }
  0x33   : > { %1062 = vmatpush3.bf16.msra.mxu0 %v1148_v12  ;;  %1065 = vmatprep.mubr.bf16.mxu0 %v1158_v20 }
  0x34   : > { %1063 = vmatprep.subr.bf16.mxu0 %v1151_v14  ;;  %1074 = vmatmul.mubr.bf16.gmra.mrb[4].mxu1 %v1157_v21 }
  0x35   : > { %1077 = vmatprep.mubr.bf16.mxu1 %v1160_v22 }
  0x37   : > { %1064 = vmatpush3.bf16.msra.mxu0 %v1151_v14 }
  0x3a   : > { %1066 = vmatmul.mubr.bf16.vlgmr.msra.gmra.mrb[16].mxu0 %v1159_v23 }
  0x3c   : > { %1078 = vmatmul.mubr.bf16.gmra.mrb[8].mxu1 %v1161_v24 }
  0xed   : > { %v1331_v25 = vpop.f32.mrb[0].mxu0 }
  0xee   : > { %v1333_v26 = vpop.f32.mrb[1].mxu0 }
  0xef   : > { %v1335_v27 = vpop.f32.mrb[2].mxu0 }
  0xf0   : > { %v1337_v28 = vpop.f32.mrb[3].mxu0 }
  0xf5   : > { %v1039_v29 = vpop.f32.mrb[4].mxu0 }
  0xf6   : > { %v473_v30 = vpop.f32.mrb[5].mxu0 }
  0xf7   : > { %v1040_v31 = vpop.f32.mrb[6].mxu0 }
  0xf8   : > { %v476_v32 = vpop.f32.mrb[7].mxu0 }
  0xfd   : > { %v1043_v33 = vpop.f32.mrb[8].mxu0 }
  0xfe   : > { %v489_v34 = vpop.f32.mrb[9].mxu0 }
  0xff   : > { %v1044_v36 = vpop.f32.mrb[10].mxu0  ;;  %v1071_v38 = vpop.f32.mrb[0].mxu1 }
 0x100   : > { %v1344_v37 = vpop.f32.mrb[11].mxu0  ;;  %v758_v40 = vmul.f32 %v1071_v38, %v1342_v35  ;;  %v698_v41 = vpop.f32.mrb[1].mxu1 }
 0x101   : > { %v756_v42 = vmul.f32 %v1342_v35, %v698_v41  ;;  %v1072_v43 = vpop.f32.mrb[2].mxu1 }
 0x102   : > { %v781_v44 = vadd.f32 %v1349_v39, %v758_v40  ;;  %v759_v45 = vmul.f32 %v1072_v43, %v1342_v35  ;;  %v701_v46 = vpop.f32.mrb[3].mxu1 }
 0x103   : > { %v779_v47 = vadd.f32 %v1349_v39, %v756_v42  ;;  %v757_v48 = vmul.f32 %v1342_v35, %v701_v46 }
 0x104   : > { %v797_v49 = vmax.f32 %v781_v44, 0.0  ;;  %v782_v50 = vadd.f32 %v1349_v39, %v759_v45 }
 0x105   : > { %v1359_v51 = vpop.f32.mrb[12].mxu0  ;;  %v795_v52 = vmax.f32 %v779_v47, 0.0  ;;  %v780_v53 = vadd.f32 %v1349_v39, %v757_v48 }
 0x106   : > { %v1367_v54 = vpop.f32.mrb[13].mxu0  ;;  %v813_v55 = vmul.f32 %v1039_v29, %v797_v49  ;;  %v798_v56 = vmax.f32 %v782_v50, 0.0 }
 0x107   : > { %v1369_v57 = vpop.f32.mrb[14].mxu0  ;;  %v811_v58 = vmul.f32 %v795_v52, %v473_v30  ;;  %v796_v59 = vmax.f32 %v780_v53, 0.0  ;;  %v1075_v61 = vpop.f32.mrb[4].mxu1 }
 0x108   : > { %v1371_v60 = vpop.f32.mrb[15].mxu0  ;;  %829 = vst [vmem:[%s1364_s29 + $0x30] sm:$0xff] %v813_v55  ;;  %v814_v62 = vmul.f32 %v1040_v31, %v798_v56  ;;  %v762_v63 = vmul.f32 %v1075_v61, %v1342_v35  ;;  %v714_v0 = vpop.f32.mrb[5].mxu1 }
 0x109   : > { %827 = vst [vmem:[%s1364_s29 + $0x20] sm:$0xff] %v811_v58  ;;  %v812_v1 = vmul.f32 %v796_v59, %v476_v32  ;;  %v760_v2 = vmul.f32 %v1342_v35, %v714_v0  ;;  %v1076_v3 = vpop.f32.mrb[6].mxu1 }
 0x10a   : > { %830 = vst [vmem:[%s1364_s29 + $0x38] sm:$0xff] %v814_v62  ;;  %v785_v4 = vadd.f32 %v1349_v39, %v762_v63  ;;  %v763_v5 = vmul.f32 %v1076_v3, %v1342_v35  ;;  %v717_v6 = vpop.f32.mrb[7].mxu1 }
 0x10b   : > { %828 = vst [vmem:[%s1364_s29 + $0x28] sm:$0xff] %v812_v1  ;;  %v783_v7 = vadd.f32 %v1349_v39, %v760_v2  ;;  %v761_v8 = vmul.f32 %v1342_v35, %v717_v6 }
 0x10c   : > { %v801_v9 = vmax.f32 %v785_v4, 0.0  ;;  %v786_v11 = vadd.f32 %v1349_v39, %v763_v5 }
 0x10d   : > { %v1067_v10 = vpop.f32.mrb[16].mxu0  ;;  %v799_v12 = vmax.f32 %v783_v7, 0.0  ;;  %v784_v15 = vadd.f32 %v1349_v39, %v761_v8 }
 0x10e   : > { %v754_v13 = vmul.f32 %v1067_v10, %v1342_v35  ;;  %v682_v14 = vpop.f32.mrb[17].mxu0  ;;  %v817_v16 = vmul.f32 %v1043_v33, %v801_v9  ;;  %v802_v17 = vmax.f32 %v786_v11, 0.0 }
 0x10f   : > { %v752_v18 = vmul.f32 %v1342_v35, %v682_v14  ;;  %v1068_v19 = vpop.f32.mrb[18].mxu0  ;;  %v815_v20 = vmul.f32 %v799_v12, %v489_v34  ;;  %v800_v22 = vmax.f32 %v784_v15, 0.0  ;;  %v1079_v29 = vpop.f32.mrb[8].mxu1 }
 0x110   : > { %v777_v21 = vadd.f32 %v1349_v39, %v754_v13  ;;  %v755_v23 = vmul.f32 %v1068_v19, %v1342_v35  ;;  %v685_v24 = vpop.f32.mrb[19].mxu0  ;;  %833 = vst [vmem:[%s1364_s29 + $0x50] sm:$0xff] %v817_v16  ;;  %v818_v30 = vmul.f32 %v1044_v36, %v802_v17  ;;  %v766_v33 = vmul.f32 %v1079_v29, %v1342_v35  ;;  %v730_v38 = vpop.f32.mrb[9].mxu1 }
 0x111   : > { %v775_v31 = vadd.f32 %v1349_v39, %v752_v18  ;;  %v753_v32 = vmul.f32 %v1342_v35, %v685_v24  ;;  %831 = vst [vmem:[%s1364_s29 + $0x40] sm:$0xff] %v815_v20  ;;  %v816_v40 = vmul.f32 %v800_v22, %v1344_v37  ;;  %v764_v42 = vmul.f32 %v1342_v35, %v730_v38  ;;  %v1080_v43 = vpop.f32.mrb[10].mxu1 }
 0x112   : > { %v793_v34 = vmax.f32 %v777_v21, 0.0  ;;  %v778_v41 = vadd.f32 %v1349_v39, %v755_v23  ;;  %834 = vst [vmem:[%s1364_s29 + $0x58] sm:$0xff] %v818_v30  ;;  %v789_v45 = vadd.f32 %v1349_v39, %v766_v33  ;;  %v767_v46 = vmul.f32 %v1080_v43, %v1342_v35  ;;  %v733_v47 = vpop.f32.mrb[11].mxu1 }
 0x113   : > { %v791_v36 = vmax.f32 %v775_v31, 0.0  ;;  %v776_v44 = vadd.f32 %v1349_v39, %v753_v32  ;;  %832 = vst [vmem:[%s1364_s29 + $0x48] sm:$0xff] %v816_v40  ;;  %v787_v49 = vadd.f32 %v1349_v39, %v764_v42  ;;  %v765_v50 = vmul.f32 %v1342_v35, %v733_v47 }
 0x114   : > { %v809_v48 = vmul.f32 %v1331_v25, %v793_v34  ;;  %v794_v37 = vmax.f32 %v778_v41, 0.0  ;;  %v805_v55 = vmax.f32 %v789_v45, 0.0  ;;  %v790_v56 = vadd.f32 %v1349_v39, %v767_v46 }
 0x115   : > { %v807_v52 = vmul.f32 %v791_v36, %v1333_v26  ;;  %v792_v53 = vmax.f32 %v776_v44, 0.0  ;;  %v803_v58 = vmax.f32 %v787_v49, 0.0  ;;  %v788_v59 = vadd.f32 %v1349_v39, %v765_v50 }
 0x116   : > { %825 = vst [vmem:[%s1364_s29 + $0x10] sm:$0xff] %v809_v48  ;;  %v810_v25 = vmul.f32 %v1335_v27, %v794_v37  ;;  %v821_v61 = vmul.f32 %v1359_v51, %v805_v55  ;;  %v806_v26 = vmax.f32 %v790_v56, 0.0 }
 0x117   : > { %823 = vst [vmem:[%s1364_s29] sm:$0xff] %v807_v52  ;;  %v808_v35 = vmul.f32 %v792_v53, %v1337_v28  ;;  %v819_v62 = vmul.f32 %v803_v58, %v1367_v54  ;;  %v804_v63 = vmax.f32 %v788_v59, 0.0 }
 0x118   : > { %826 = vst [vmem:[%s1364_s29 + $0x18] sm:$0xff] %v810_v25  ;;  %837 = vst [vmem:[%s1364_s29 + $0x70] sm:$0xff] %v821_v61  ;;  %v822_v0 = vmul.f32 %v1369_v57, %v806_v26 }
 0x119   : > { %824 = vst [vmem:[%s1364_s29 + $0x8] sm:$0xff] %v808_v35  ;;  %835 = vst [vmem:[%s1364_s29 + $0x60] sm:$0xff] %v819_v62  ;;  %v820_v27 = vmul.f32 %v804_v63, %v1371_v60 }
 0x11a   : > { %838 = vst [vmem:[%s1364_s29 + $0x78] sm:$0xff] %v822_v0 }
 0x11b   : > { %836 = vst [vmem:[%s1364_s29 + $0x68] sm:$0xff] %v820_v27 }
 0x11c PF: > { %s16_s25 = sadd.s32 1, %s1200_s25   ;;  %s1444_s21 = smov %s1192_s23 }
 0x11d   : > { %p13_p7 = scmp.ge.s32.totalorder %s16_s25, 6   ;;  %s1445_s22 = smov %s1196_s24 }
 0x11e   : > { %s1446_s23 = smov %s1449_s26  ;;  %s1447_s24 = smov %s1453_s27 }
 0x11f   :  { %15 = sbr.rel (!%p13_p7) target bundleno = 3 (0x3), region = 80 }

</bundles_post_ra>
